<compile_context>
chip_gen: v7x
topology: tpu7x:2x2x1
jax: 0.10.0
libtpu: 0.0.40
codegen_flags: <defaults>
</compile_context>

<pallas_src>
import functools

import jax
import jax.numpy as jnp
from jax.experimental import pallas as pl
from jax.experimental.pallas import tpu as pltpu


def _patch_embed_kernel(x_ref, w_ref, b_ref, o_ref, *, precision):
    # x_ref: (K, tmo) patch-matrix tile (K = Cin*p*p rows, tmo lanes)
    # w_ref: (Cout, K) flattened conv weight   b_ref: (Cout, 1) f32 bias
    # o_ref: (Cout, tmo) lane-dense output tile
    y = jnp.dot(
        w_ref[...],
        x_ref[...],
        preferred_element_type=jnp.float32,
        precision=precision,
    )
    o_ref[...] = (y + b_ref[...]).astype(o_ref.dtype)


def _choose_spatial_tile(mo, num_images, target=4096):
    """Spatial (lane) tile size for the (K, Mo) patch matrix.

    Legal by construction: returns either a multiple of 128 that divides `mo`,
    or `mo` itself (full extent) -- never anything else. Prefers the largest
    such tile <= `target` that still leaves the grid with >= 2 steps (so both
    v7x TensorCores have work); falls back to the largest tile <= target, then
    to the full extent.
    """
    if mo % 128 != 0:
        # No multiple of 128 divides mo; full extent is the only legal choice
        # that avoids a pad copy.
        return mo
    best = None
    start = (min(target, mo) // 128) * 128
    for t in range(start, 0, -128):
        if mo % t == 0:
            if num_images * (mo // t) >= 2:
                return t
            if best is None:
                best = t
    return best if best is not None else mo


def patch_embed_pallas(x, weight, bias, *, patch_size, spatial_tile_target=4096):
    """x: (N, Cin, H, W) NCHW; weight: (Cout, Cin, p, p) PyTorch OIHW; bias: (Cout,).

    Returns (N, Cout, H//p, W//p), matching nn.Conv2d(kernel=stride=p) + Identity.
    For bf16 throughput, cast x (and weight) to bfloat16 before calling; the
    kernel accumulates in f32 and only the final store uses the I/O dtype.
    """
    N, Cin, H, W = x.shape
    p = patch_size
    assert H % p == 0 and W % p == 0, "spatial dims must be divisible by patch_size"
    Ho, Wo = H // p, W // p
    Cout = weight.shape[0]
    K = Cin * p * p
    Mo = Ho * Wo

    # Non-overlapping patch extraction (stride == kernel): reshape + transpose.
    # The reshapes are free; the transpose is the only data-movement pass and is
    # eligible for fusion into the pallas_call input (allow_input_fusion below).
    # (N, Cin, Ho, p, Wo, p) -> (N, Cin, kh, kw, Ho, Wo) -> (N, K, Ho*Wo)
    xp = x.reshape(N, Cin, Ho, p, Wo, p)
    xp = jnp.transpose(xp, (0, 1, 3, 5, 2, 4))
    xp = xp.reshape(N, K, Mo)

    # PyTorch OIHW weight (Cout, Cin, kh, kw) -> (Cout, K); K order matches xp.
    w_mat = weight.reshape(Cout, K).astype(x.dtype)
    # Bias stays f32: the add happens on the f32 accumulator (v5e VPU has no bf16).
    b_col = bias.astype(jnp.float32).reshape(Cout, 1)

    tmo = _choose_spatial_tile(Mo, N, target=spatial_tile_target)
    grid = (N, Mo // tmo)

    # Exact f32 parity with the PyTorch module needs HIGHEST; bf16 inputs take
    # the native single-pass MXU path. (Precision.HIGH is not accepted by the
    # Mosaic dot lowering, so it is not used even though 3-pass would suffice.)
    precision = (
        jax.lax.Precision.HIGHEST
        if jnp.dtype(x.dtype) == jnp.float32
        else jax.lax.Precision.DEFAULT
    )

    # Tile-derived VMEM budget: double-buffered in/out tiles + resident W, b,
    # with headroom; floor = 32 MiB scoped default, cap = 64 MiB (v7x physical).
    lane_pad = lambda v: -(-v // 128) * 128
    sub_pad = lambda v: -(-v // 8) * 8
    isz = jnp.dtype(x.dtype).itemsize
    tile_bytes = (sub_pad(K) + sub_pad(Cout)) * lane_pad(tmo) * isz
    wb_bytes = sub_pad(Cout) * (lane_pad(K) * isz + 128 * 4)
    vmem_limit = int(min(max(4 * tile_bytes + 4 * wb_bytes + (8 << 20), 32 << 20), 64 << 20))

    flops = 2 * N * Cout * K * Mo
    bytes_accessed = isz * N * Mo * (K + Cout) + isz * Cout * K + 4 * Cout

    out = pl.pallas_call(
        functools.partial(_patch_embed_kernel, precision=precision),
        out_shape=jax.ShapeDtypeStruct((N, Cout, Mo), x.dtype),
        grid_spec=pl.GridSpec(
            grid=grid,
            in_specs=[
                # batch dim squeezed out of the kernel view; spatial along lanes.
                pl.BlockSpec((None, K, tmo), lambda n, m: (n, 0, m)),
                pl.BlockSpec((Cout, K), lambda n, m: (0, 0)),   # weights resident
                pl.BlockSpec((Cout, 1), lambda n, m: (0, 0)),   # bias resident
            ],
            out_specs=pl.BlockSpec((None, Cout, tmo), lambda n, m: (n, 0, m)),
        ),
        compiler_params=pltpu.CompilerParams(
            dimension_semantics=("parallel", "parallel"),
            vmem_limit_bytes=vmem_limit,
            # Allow XLA to fold the im2col transpose into the kernel's input
            # (operand 0 only) instead of a separate HBM round trip.
            allow_input_fusion=[True, False, False],
        ),
        cost_estimate=pl.CostEstimate(
            flops=flops, transcendentals=0, bytes_accessed=bytes_accessed
        ),
    )(xp, w_mat, b_col)

    # (N, Cout, Ho*Wo) -> (N, Cout, Ho, Wo): contiguous reshape, no transpose.
    return out.reshape(N, Cout, Ho, Wo)


def patch_embed_reference(x, weight, bias, *, patch_size):
    p = patch_size
    y = jax.lax.conv_general_dilated(
        x,
        weight,
        window_strides=(p, p),
        padding="VALID",
        dimension_numbers=("NCHW", "OIHW", "NCHW"),
        precision=jax.lax.Precision.HIGHEST,
    )
    return y + bias.reshape(1, -1, 1, 1)


if __name__ == "__main__":
    # Module defaults: in_chans=3, out_channels=48, patch_size=4; small NCHW
    # input (2, 3, 16, 16) -> output (2, 48, 4, 4).
    N, Cin, H, W = 2, 3, 16, 16
    patch_size = 4
    Cout = 48

    key = jax.random.PRNGKey(0)
    kx, kw, kb = jax.random.split(key, 3)

    x = jax.random.normal(kx, (N, Cin, H, W), dtype=jnp.float32)
    fan_in = Cin * patch_size * patch_size
    scale = 1.0 / jnp.sqrt(jnp.float32(fan_in))
    w = scale * jax.random.normal(kw, (Cout, Cin, patch_size, patch_size), dtype=jnp.float32)
    b = scale * jax.random.normal(kb, (Cout,), dtype=jnp.float32)

    out = patch_embed_pallas(x, w, b, patch_size=patch_size)
    out = jax.block_until_ready(out)

    ref = patch_embed_reference(x, w, b, patch_size=patch_size)
    assert out.shape == (N, Cout, H // patch_size, W // patch_size), out.shape
    max_err = float(jnp.max(jnp.abs(out - ref)))
    assert jnp.allclose(out, ref, atol=1e-4, rtol=1e-4), max_err

    print("KERNEL_OK")
</pallas_src>

<mosaic_0001>
module attributes {stable_mosaic.version = 11 : i64} {
  func.func @_patch_embed_kernel(%arg0: i32, %arg1: i32, %arg2: memref<1x48x16xf32, #tpu.memory_space<vmem>>, %arg3: memref<48x48xf32, #tpu.memory_space<vmem>>, %arg4: memref<48x1xf32, #tpu.memory_space<vmem>>, %arg5: memref<1x48x16xf32, #tpu.memory_space<vmem>>) attributes {dimension_semantics = [#tpu.dimension_semantics<parallel>, #tpu.dimension_semantics<parallel>], iteration_bounds = array<i64: 2, 1>, scalar_prefetch = 0 : i64, scratch_operands = 0 : i64, tpu.core_type = #tpu.core_type<tc>, window_params = [{transform_indices = @transform_0, window_bounds = array<i64: 1, 48, 16>}, {pipeline_mode = #tpu.pipeline_mode<synchronous>, transform_indices = @transform_1, window_bounds = array<i64: 48, 48>}, {pipeline_mode = #tpu.pipeline_mode<synchronous>, transform_indices = @transform_2, window_bounds = array<i64: 48, 1>}, {transform_indices = @transform_3, window_bounds = array<i64: 1, 48, 16>}]} {
    %c0 = arith.constant 0 : index
    %c0_0 = arith.constant 0 : index
    %0 = vector.load %arg3[%c0, %c0_0] : memref<48x48xf32, #tpu.memory_space<vmem>>, vector<48x48xf32>
    %c0_1 = arith.constant 0 : index
    %c0_2 = arith.constant 0 : index
    %c0_3 = arith.constant 0 : index
    %1 = vector.load %arg2[%c0_1, %c0_2, %c0_3] : memref<1x48x16xf32, #tpu.memory_space<vmem>>, vector<1x48x16xf32>
    %2 = vector.shape_cast %1 : vector<1x48x16xf32> to vector<48x16xf32>
    %cst = arith.constant dense<0.000000e+00> : vector<48x16xf32>
    %3 = tpu.matmul %0, %2, %cst {dimension_numbers = #tpu.dot_dimension_numbers<[1], [0], [0], [1], [0, 0, 1, 1], [], []>, precision = #tpu.contract_precision<fp32>} : vector<48x48xf32>, vector<48x16xf32>, vector<48x16xf32> -> vector<48x16xf32>
    %c0_4 = arith.constant 0 : index
    %c0_5 = arith.constant 0 : index
    %4 = vector.load %arg4[%c0_4, %c0_5] : memref<48x1xf32, #tpu.memory_space<vmem>>, vector<48x1xf32>
    %5 = vector.broadcast %4 : vector<48x1xf32> to vector<48x16xf32>
    %6 = arith.addf %3, %5 : vector<48x16xf32>
    %c0_6 = arith.constant 0 : index
    %c0_7 = arith.constant 0 : index
    %c0_8 = arith.constant 0 : index
    %7 = vector.load %arg5[%c0_6, %c0_7, %c0_8] : memref<1x48x16xf32, #tpu.memory_space<vmem>>, vector<1x48x16xf32>
    %8 = vector.shape_cast %7 : vector<1x48x16xf32> to vector<48x16xf32>
    %9 = vector.shape_cast %6 : vector<48x16xf32> to vector<1x48x16xf32>
    tpu.vector_store %arg5[%c0_6, %c0_7, %c0_8], %9 {strides = array<i32>} : memref<1x48x16xf32, #tpu.memory_space<vmem>>, vector<1x48x16xf32>,
    return
  }
  func.func @transform_0(%arg0: i32, %arg1: i32) -> (i32, i32, i32) {
    %c0_i32 = arith.constant 0 : i32
    %c0_i32_0 = arith.constant 0 : i32
    return %arg0, %c0_i32, %arg1 : i32, i32, i32
  }
  func.func @transform_1(%arg0: i32, %arg1: i32) -> (i32, i32) {
    %c0_i32 = arith.constant 0 : i32
    %c0_i32_0 = arith.constant 0 : i32
    %c0_i32_1 = arith.constant 0 : i32
    return %c0_i32, %c0_i32_0 : i32, i32
  }
  func.func @transform_2(%arg0: i32, %arg1: i32) -> (i32, i32) {
    %c0_i32 = arith.constant 0 : i32
    %c0_i32_0 = arith.constant 0 : i32
    %c0_i32_1 = arith.constant 0 : i32
    return %c0_i32, %c0_i32_0 : i32, i32
  }
  func.func @transform_3(%arg0: i32, %arg1: i32) -> (i32, i32, i32) {
    %c0_i32 = arith.constant 0 : i32
    %c0_i32_0 = arith.constant 0 : i32
    return %arg0, %c0_i32, %arg1 : i32, i32, i32
  }
}

</mosaic_0001>

<bundles_post_ra>
// kernel: tpu_custom_call.1
= control target key start
LH: loop header
LB: loop body
LE: loop exit
PB: predicated region body
PF: predicated region fallthrough
CT: control target
= control target key end

     0   :  { %s1473_s12 = smov 0   ;;  %s1475_s13 = smov 0   ;;  %s1681_s0 = inlined_call_operand.vmem [shape: f32[2,48,16], index: 0, kind: input, shape index: {}]   ;;  %s1682_s1 = inlined_call_operand.vmem [shape: f32[48,48], index: 1, kind: input, shape index: {}]   ;;  %s1683_s2 = inlined_call_operand.vmem [shape: f32[48,1], index: 2, kind: input, shape index: {}]   ;;  %s1684_s3 = inlined_call_operand.vmem [shape: f32[2,48,16], index: 3, kind: output, shape index: {}]  }
   0x1   :  { %s1477_s14 = smov 0  }
   0x2 LB: > { %s25_s15 = sadd.s32 1, %s1446_s13  ;;  %p1089_p0 = scmp.ge.s32.totalorder %s1450_s14, 1  ;;  %s1450_s14 = sphi %s1477_s14, %s13_s14   ;;  %s1446_s13 = sphi %s1475_s13, %s1686_s13   ;;  %s1442_s12 = sphi %s1473_s12, %s1685_s12  }
   0x3   : > { %p27_p1 = scmp.ge.s32.totalorder %s25_s15, 2  ;;  %p156_p2 = scmp.lt.s32.totalorder %s1450_s14, 3 }
   0x5   : > { %s1688_s15 = smov (%p27_p1, %s25_s15), 0  ;;  %p157_p3 = pnand %p1089_p0, %p156_p2 }
   0x6   : > { %p186_p4 = scmp.lt.s32.totalorder (!%p157_p3), %s1442_s12, 1  ;;  %v202_v0 = vld [vmem:[%s1682_s1] sm:$0xff] (!%p157_p3)  ;;  %vm250_vm0 = vcmask (!%p157_p3), 392192   ;;  %v203_v1 = vld [vmem:[%s1682_s1 + $0x8] sm:$0xff] (!%p157_p3)  ;;  %v204_v2 = vld [vmem:[%s1682_s1 + $0x10] sm:$0xff] (!%p157_p3)  ;;  %v1452_v7 = vmov (!%p157_p3), 0  }
   0x7   : > { %160 = sbr.rel (%p157_p3) target bundleno = 285 (0x11d), region = 32  ;;  %v252_v3 = vsel (!%p157_p3), %vm250_vm0, %v202_v0, 0  ;;  %v255_v4 = vsel (!%p157_p3), %vm250_vm0, %v203_v1, 0  ;;  %v258_v5 = vsel (!%p157_p3), %vm250_vm0, %v204_v2, 0  ;;  %v205_v6 = vld [vmem:[%s1682_s1 + $0x18] sm:$0xff] (!%p157_p3)  ;;  %1427 = vset.pattern.permute.xlu1 (!%p157_p3), %v1452_v7  ;;  %1426 = vset.pattern.permute.xlu0 (!%p157_p3), %v1452_v7  ;;  %v216_v10 = vld [vmem:[%s1683_s2 + $0x10] sm:$0xff] (!%p157_p3) }
   0x8   : > { %v1508_v8 = vand.u32 (!%p157_p3), 4294901760, %v252_v3  ;;  %v261_v9 = vsel (!%p157_p3), %vm250_vm0, %v205_v6, 0  ;;  %v1514_v11 = vand.u32 (!%p157_p3), 4294901760, %v255_v4  ;;  %v1516_v12 = vand.u32 (!%p157_p3), 4294901760, %v258_v5  ;;  %v206_v13 = vld [vmem:[%s1682_s1 + $0x20] sm:$0xff] (!%p157_p3)  ;;  %232 = vperm.xlu1 (!%p157_p3), %1427, %v216_v10   ;;  %v207_v16 = vld [vmem:[%s1682_s1 + $0x28] sm:$0xff] (!%p157_p3) }
   0x9   : > { %v214_v14 = vld [vmem:[%s1683_s2] sm:$0xff] (!%p157_p3)  ;;  %v217_v17 = vld [vmem:[%s1683_s2 + $0x18] sm:$0xff] (!%p157_p3)  ;;  %v1534_v18 = vand.u32 (!%p157_p3), 4294901760, %v261_v9  ;;  %v215_v19 = vld [vmem:[%s1683_s2 + $0x8] sm:$0xff] (!%p157_p3)  ;;  %v264_v21 = vsel (!%p157_p3), %vm250_vm0, %v206_v13, 0  ;;  %v267_v28 = vsel (!%p157_p3), %vm250_vm0, %v207_v16, 0 }
   0xa   : > { %v1526_v15 = vsub.f32 (!%p157_p3), %v252_v3, %v1508_v8  ;;  %222 = vperm.xlu0 (!%p157_p3), %1426, %v214_v14   ;;  %v219_v22 = vld [vmem:[%s1683_s2 + $0x28] sm:$0xff] (!%p157_p3)  ;;  %v1550_v26 = vsub.f32 (!%p157_p3), %v255_v4, %v1514_v11  ;;  %v1553_v27 = vsub.f32 (!%p157_p3), %v258_v5, %v1516_v12  ;;  %v1560_v39 = vand.u32 (!%p157_p3), 4294901760, %v264_v21  ;;  %v218_v51 = vld [vmem:[%s1683_s2 + $0x20] sm:$0xff] (!%p157_p3) }
   0xb   : > { %v1558_v38 = vsub.f32 (!%p157_p3), %v261_v9, %v1534_v18  ;;  %v1571_v47 = vand.u32 (!%p157_p3), 4294901760, %v267_v28  ;;  %vm995_vm1 = vcmask (!%p157_p3), 130048  }
   0xc   : > { %v342_v20 = vand.u32 (!%p157_p3), 4294901760, %v1526_v15  ;;  %237 = vperm.xlu1 (!%p157_p3), %1427, %v217_v17   ;;  %v352_v46 = vand.u32 (!%p157_p3), 4294901760, %v1550_v26  ;;  %v362_v52 = vand.u32 (!%p157_p3), 4294901760, %v1553_v27  ;;  %v1588_v54 = vsub.f32 (!%p157_p3), %v264_v21, %v1560_v39 }
   0xd   : > { %v372_v58 = vand.u32 (!%p157_p3), 4294901760, %v1558_v38  ;;  %v1601_v62 = vsub.f32 (!%p157_p3), %v267_v28, %v1571_v47 }
   0xe   : > { %s1690_s12 = smov (!%p186_p4, %s1442_s12), 1  ;;  %v343_v35 = vsub.f32 %v1526_v15, %v342_v20  ;;  %1241 = vmatprep.mubr.f32.mxu0 %v342_v20  ;;  %227 = vperm.xlu0 %1426, %v215_v19   ;;  %v353_v59 = vsub.f32 %v1550_v26, %v352_v46  ;;  %v363_v3 = vsub.f32 %v1553_v27, %v362_v52  ;;  %v382_v6 = vand.u32 4294901760, %v1588_v54 }
   0xf   : > { %s1400_s30 = smul.u32 48, %s1690_s12  ;;  %v373_v19 = vsub.f32 %v1558_v38, %v372_v58  ;;  %v392_v20 = vand.u32 4294901760, %v1601_v62 }
  0x10   : > { %v344_v45 = vand.u32 4294901760, %v343_v35  ;;  %247 = vperm.xlu1 %1427, %v219_v22   ;;  %v354_v14 = vand.u32 4294901760, %v353_v59 }
  0x11   : > { %s193_s16 = scalar_lea.vmem %s1681_s0, %s1400_s30  ;;  %s201_s23 = scalar_lea.vmem %s1684_s3, %s1400_s30 }
  0x12   : > { %v208_v23 = vld [vmem:[%s193_s16] sm:$0xff]  ;;  %v209_v24 = vld [vmem:[%s193_s16 + $0x8] sm:$0xff]  ;;  %v210_v25 = vld [vmem:[%s193_s16 + $0x10] sm:$0xff]  ;;  %1178 = vmatprep.mubr.f32.mxu1 %v344_v45  ;;  %242 = vperm.xlu0 %1426, %v218_v51  }
  0x13   : > { %v270_v29 = vand.u32 4294901760, %v208_v23  ;;  %v273_v30 = vand.u32 4294901760, %v209_v24  ;;  %v211_v31 = vld [vmem:[%s193_s16 + $0x18] sm:$0xff]  ;;  %v276_v32 = vand.u32 4294901760, %v210_v25  ;;  %v212_v33 = vld [vmem:[%s193_s16 + $0x20] sm:$0xff]  ;;  %v213_v34 = vld [vmem:[%s193_s16 + $0x28] sm:$0xff] }
  0x14   : > { %v279_v36 = vand.u32 4294901760, %v211_v31  ;;  %v282_v37 = vand.u32 4294901760, %v212_v33  ;;  %v285_v41 = vand.u32 4294901760, %v213_v34 }
  0x15   : > { %v1562_v40 = vpack.c.bf16 %v273_v30, %v270_v29  ;;  %v1564_v42 = vsub.f32 %v208_v23, %v270_v29  ;;  %v1566_v43 = vsub.f32 %v209_v24, %v273_v30  ;;  %v1577_v50 = vsub.f32 %v210_v25, %v276_v32 }
  0x16   : > { %v1568_v44 = vpack.c.bf16 %v279_v36, %v276_v32  ;;  %v1585_v53 = vsub.f32 %v211_v31, %v279_v36  ;;  %v1592_v55 = vpack.c.bf16 %v285_v41, %v282_v37  ;;  %v1603_v1 = vsub.f32 %v212_v33, %v282_v37 }
  0x17   : > { %1293 = vmatprep.subr.bf16.mxu1 %v1562_v40  ;;  %1329 = vmatprep.subr.bf16.mxu0 %v1562_v40  ;;  %v403_v48 = vand.u32 4294901760, %v1564_v42  ;;  %v410_v49 = vand.u32 4294901760, %v1566_v43  ;;  %v417_v60 = vand.u32 4294901760, %v1577_v50  ;;  %v1605_v2 = vsub.f32 %v213_v34, %v285_v41 }
  0x18   : > { %1295 = vmatpush3.bf16.msra.mxu1 %v1562_v40  ;;  %1331 = vmatpush3.bf16.msra.mxu0 %v1562_v40  ;;  %v424_v61 = vand.u32 4294901760, %v1585_v53  ;;  %v431_v10 = vand.u32 4294901760, %v1603_v1  ;;  %v364_v23 = vand.u32 4294901760, %v363_v3  ;;  %v383_v24 = vsub.f32 %v1588_v54, %v382_v6 }
  0x19   : > { %1297 = vmatprep.subr.bf16.mxu1 %v1568_v44  ;;  %1333 = vmatprep.subr.bf16.mxu0 %v1568_v44  ;;  %v404_v56 = vsub.f32 %v1564_v42, %v403_v48  ;;  %v411_v57 = vsub.f32 %v1566_v43, %v410_v49  ;;  %v418_v4 = vsub.f32 %v1577_v50, %v417_v60  ;;  %v438_v13 = vand.u32 4294901760, %v1605_v2 }
  0x1a   : > { %v425_v5 = vsub.f32 %v1585_v53, %v424_v61  ;;  %v1340_v9 = vpack.c.bf16 %v410_v49, %v403_v48  ;;  %v432_v21 = vsub.f32 %v1603_v1, %v431_v10  ;;  %v1344_v28 = vpack.c.bf16 %v424_v61, %v417_v60 }
  0x1b   : > { %v405_v63 = vand.u32 4294901760, %v404_v56  ;;  %v412_v0 = vand.u32 4294901760, %v411_v57  ;;  %v419_v16 = vand.u32 4294901760, %v418_v4  ;;  %v439_v22 = vsub.f32 %v1605_v2, %v438_v13 }
  0x1c   : > { %1299 = vmatpush3.bf16.msra.mxu1 %v1568_v44  ;;  %1335 = vmatpush3.bf16.msra.mxu0 %v1568_v44  ;;  %v426_v17 = vand.u32 4294901760, %v425_v5  ;;  %v433_v29 = vand.u32 4294901760, %v432_v21  ;;  %v374_v31 = vand.u32 4294901760, %v373_v19  ;;  %v393_v32 = vsub.f32 %v1601_v62, %v392_v20 }
  0x1d   : > { %1301 = vmatprep.subr.bf16.mxu1 %v1592_v55  ;;  %1337 = vmatprep.subr.bf16.mxu0 %v1592_v55  ;;  %v1304_v7 = vpack.c.bf16 %v412_v0, %v405_v63  ;;  %v440_v30 = vand.u32 4294901760, %v439_v22  ;;  %v384_v33 = vand.u32 4294901760, %v383_v24  ;;  %v1348_v35 = vpack.c.bf16 %v438_v13, %v431_v10 }
  0x1e   : > { %v1308_v25 = vpack.c.bf16 %v426_v17, %v419_v16  ;;  %v394_v36 = vand.u32 4294901760, %v393_v32  ;;  %v1316_v37 = vpack.c.bf16 %v1566_v43, %v1564_v42  ;;  %v1320_v41 = vpack.c.bf16 %v1585_v53, %v1577_v50 }
  0x1f   : > { %v1312_v34 = vpack.c.bf16 %v440_v30, %v433_v29  ;;  %v1324_v42 = vpack.c.bf16 %v1605_v2, %v1603_v1 }
  0x20   : > { %1303 = vmatpush3.bf16.msra.mxu1 %v1592_v55  ;;  %1339 = vmatpush3.bf16.msra.mxu0 %v1592_v55 }
  0x21   : > { %1305 = vmatprep.subr.bf16.mxu1 %v1304_v7  ;;  %1341 = vmatprep.subr.bf16.mxu0 %v1340_v9 }
  0x23   : > { %1179 = vmatmul.mubr.f32.vlgmr.msra.gmra.mrb[0].mxu1 %v354_v14  ;;  %1242 = vmatmul.mubr.f32.vlgmr.msra.gmra.mrb[0].mxu0 %v352_v46 }
  0x24   : > { %1307 = vmatpush3.bf16.msra.mxu1 %v1304_v7  ;;  %1343 = vmatpush3.bf16.msra.mxu0 %v1340_v9 }
  0x25   : > { %1181 = vmatprep.mubr.f32.mxu1 %v364_v23  ;;  %1244 = vmatprep.mubr.f32.mxu0 %v362_v52 }
  0x26   : > { %1309 = vmatprep.subr.bf16.mxu1 %v1308_v25  ;;  %1345 = vmatprep.subr.bf16.mxu0 %v1344_v28 }
  0x27   : > { %1182 = vmatmul.mubr.f32.gmra.mrb[2].mxu1 %v374_v31  ;;  %1245 = vmatmul.mubr.f32.gmra.mrb[2].mxu0 %v372_v58 }
  0x28   : > { %1311 = vmatpush3.bf16.msra.mxu1 %v1308_v25  ;;  %1347 = vmatpush3.bf16.msra.mxu0 %v1344_v28 }
  0x29   : > { %1184 = vmatprep.mubr.f32.mxu1 %v384_v33  ;;  %1247 = vmatprep.mubr.f32.mxu0 %v382_v6 }
  0x2a   : > { %1313 = vmatprep.subr.bf16.mxu1 %v1312_v34  ;;  %1349 = vmatprep.subr.bf16.mxu0 %v1348_v35 }
  0x2b   : > { %1185 = vmatmul.mubr.f32.gmra.mrb[4].mxu1 %v394_v36  ;;  %1248 = vmatmul.mubr.f32.gmra.mrb[4].mxu0 %v392_v20 }
  0x2c   : > { %1315 = vmatpush3.bf16.msra.mxu1 %v1312_v34  ;;  %1351 = vmatpush3.bf16.msra.mxu0 %v1348_v35 }
  0x2d   : > { %1199 = vmatprep.mubr.f32.mxu1 %v1508_v8  ;;  %1262 = vmatprep.mubr.f32.mxu0 %v1508_v8 }
  0x2e   : > { %1317 = vmatprep.subr.bf16.mxu1 %v1316_v37  ;;  %1353 = vmatprep.subr.bf16.mxu0 %v1562_v40 }
  0x2f   : > { %1200 = vmatmul.mubr.f32.vlgmr.msra.gmra.mrb[0].mxu1 %v1514_v11  ;;  %1263 = vmatmul.mubr.f32.vlgmr.msra.gmra.mrb[0].mxu0 %v1514_v11 }
  0x30   : > { %1319 = vmatpush3.bf16.msra.mxu1 %v1316_v37  ;;  %1355 = vmatpush3.bf16.msra.mxu0 %v1562_v40 }
  0x31   : > { %1202 = vmatprep.mubr.f32.mxu1 %v1516_v12  ;;  %1265 = vmatprep.mubr.f32.mxu0 %v1516_v12 }
  0x32   : > { %1321 = vmatprep.subr.bf16.mxu1 %v1320_v41  ;;  %1357 = vmatprep.subr.bf16.mxu0 %v1568_v44 }
  0x33   : > { %1203 = vmatmul.mubr.f32.gmra.mrb[2].mxu1 %v1534_v18  ;;  %1266 = vmatmul.mubr.f32.gmra.mrb[2].mxu0 %v1534_v18 }
  0x34   : > { %1323 = vmatpush3.bf16.msra.mxu1 %v1320_v41  ;;  %1359 = vmatpush3.bf16.msra.mxu0 %v1568_v44 }
  0x35   : > { %1205 = vmatprep.mubr.f32.mxu1 %v1560_v39  ;;  %1268 = vmatprep.mubr.f32.mxu0 %v1560_v39 }
  0x36   : > { %1325 = vmatprep.subr.bf16.mxu1 %v1324_v42  ;;  %1361 = vmatprep.subr.bf16.mxu0 %v1592_v55 }
  0x37   : > { %1206 = vmatmul.mubr.f32.gmra.mrb[4].mxu1 %v1571_v47  ;;  %1269 = vmatmul.mubr.f32.gmra.mrb[4].mxu0 %v1571_v47 }
  0x38   : > { %1327 = vmatpush3.bf16.msra.mxu1 %v1324_v42  ;;  %1363 = vmatpush3.bf16.msra.mxu0 %v1592_v55 }
  0x39   : > { %1220 = vmatprep.mubr.f32.mxu1 %v1526_v15  ;;  %1283 = vmatprep.mubr.f32.mxu0 %v1508_v8 }
  0x3b   : > { %1221 = vmatmul.mubr.f32.vlgmr.msra.gmra.mrb[0].mxu1 %v1550_v26  ;;  %1284 = vmatmul.mubr.f32.vlgmr.msra.gmra.mrb[0].mxu0 %v1514_v11 }
  0x3c   : > { %1223 = vmatprep.mubr.f32.mxu1 %v1553_v27  ;;  %1286 = vmatprep.mubr.f32.mxu0 %v1516_v12 }
  0x3f   : > { %1224 = vmatmul.mubr.f32.gmra.mrb[2].mxu1 %v1558_v38  ;;  %1287 = vmatmul.mubr.f32.gmra.mrb[2].mxu0 %v1534_v18 }
  0x40   : > { %1226 = vmatprep.mubr.f32.mxu1 %v1588_v54  ;;  %1289 = vmatprep.mubr.f32.mxu0 %v1560_v39 }
  0x43   : > { %1227 = vmatmul.mubr.f32.gmra.mrb[4].mxu1 %v1601_v62  ;;  %1290 = vmatmul.mubr.f32.gmra.mrb[4].mxu0 %v1571_v47 }
  0x87   : > { %v233_v8 = vpop.permute.xlu1 %232 }
  0x89   : > { %v223_v15 = vpop.permute.xlu0 %222 }
  0x8b   : > { %v238_v11 = vpop.permute.xlu1 %237 }
  0x8d   : > { %v228_v26 = vpop.permute.xlu0 %227 }
  0x8f   : > { %v248_v51 = vpop.permute.xlu1 %247 }
  0x91   : > { %v243_v52 = vpop.permute.xlu0 %242 }
 0x10e   : > { %v1222_v27 = vpop.f32.mrb[0].mxu1  ;;  %v1285_v40 = vpop.f32.mrb[0].mxu0 }
 0x10f   : > { %v1364_v12 = vadd.f32 %v1222_v27, %v228_v26  ;;  %v611_v43 = vpop.f32.mrb[1].mxu1  ;;  %v961_v44 = vpop.f32.mrb[1].mxu0 }
 0x110   : > { %v1366_v18 = vadd.f32 %v611_v43, %v223_v15 }
 0x111   : > { %v1365_v38 = vadd.f32 %v1364_v12, %v1285_v40 }
 0x112   : > { %v1367_v39 = vadd.f32 %v1366_v18, %v961_v44  ;;  %v1225_v45 = vpop.f32.mrb[2].mxu1  ;;  %v1288_v46 = vpop.f32.mrb[2].mxu0 }
 0x113   : > { %997 = vst.msk [vmem:[%s201_s23 + $0x8] sm:$0xff] %vm995_vm1, %v1365_v38  ;;  %v1368_v47 = vadd.f32 %v1225_v45, %v238_v11  ;;  %v625_v48 = vpop.f32.mrb[3].mxu1  ;;  %v973_v49 = vpop.f32.mrb[3].mxu0 }
 0x114   : > { %996 = vst.msk [vmem:[%s201_s23] sm:$0xff] %vm995_vm1, %v1367_v39  ;;  %v1370_v50 = vadd.f32 %v625_v48, %v233_v8 }
 0x115   : > { %v1369_v53 = vadd.f32 %v1368_v47, %v1288_v46 }
 0x116   : > { %v1371_v54 = vadd.f32 %v1370_v50, %v973_v49  ;;  %v1228_v55 = vpop.f32.mrb[4].mxu1  ;;  %v1291_v56 = vpop.f32.mrb[4].mxu0 }
 0x117   : > { %999 = vst.msk [vmem:[%s201_s23 + $0x18] sm:$0xff] %vm995_vm1, %v1369_v53  ;;  %v1372_v57 = vadd.f32 %v1228_v55, %v248_v51  ;;  %v639_v58 = vpop.f32.mrb[5].mxu1  ;;  %v985_v59 = vpop.f32.mrb[5].mxu0 }
 0x118   : > { %998 = vst.msk [vmem:[%s201_s23 + $0x10] sm:$0xff] %vm995_vm1, %v1371_v54  ;;  %v1374_v60 = vadd.f32 %v639_v58, %v243_v52 }
 0x119   : > { %v1373_v61 = vadd.f32 %v1372_v57, %v1291_v56 }
 0x11a   : > { %v1375_v62 = vadd.f32 %v1374_v60, %v985_v59 }
 0x11b   : > { %1001 = vst.msk [vmem:[%s201_s23 + $0x28] sm:$0xff] %vm995_vm1, %v1373_v61 }
 0x11c   : > { %1000 = vst.msk [vmem:[%s201_s23 + $0x20] sm:$0xff] %vm995_vm1, %v1375_v62 }
 0x11d PF: > { %s13_s14 = sadd.s32 1, %s1450_s14   ;;  %s1685_s12 = smov %s1446_s13 }
 0x11e   : > { %p10_p5 = scmp.ge.s32.totalorder %s13_s14, 4   ;;  %s1686_s13 = smov %s1688_s15 }
 0x120   :  { %12 = sbr.rel (!%p10_p5) target bundleno = 2 (0x2), region = 62 }

</bundles_post_ra>
